<compile_context>
chip_gen: v7x
topology: tpu7x:2x2x1
jax: 0.10.0
libtpu: 0.0.40
codegen_flags: <defaults>
</compile_context>

<pallas_src>
import functools

import jax
import jax.numpy as jnp
from jax.experimental import pallas as pl
from jax.experimental.pallas import tpu as pltpu


def rnn_seq_kernel(x_ref, h0_ref, w1x_ref, w1h_ref, b1_ref, w2_ref, b2_ref,
                   out_ref, h_ref, *, n_classes):
    t = pl.program_id(1)

    # Initialize the VMEM-resident hidden carry at the start of each batch
    # block's time loop.
    @pl.when(t == 0)
    def _init():
        h_ref[...] = h0_ref[...]

    h_prev = h_ref[...]                                       # (bb, H) f32 carry

    # hidden = Linear(input_size + H -> H)(cat([x, h_prev]))
    # -> concat split into two MXU matmuls; bf16 inputs, f32 accumulation.
    h = (jnp.dot(x_ref[...], w1x_ref[...], preferred_element_type=jnp.float32)
         + jnp.dot(h_prev.astype(jnp.bfloat16), w1h_ref[...],
                   preferred_element_type=jnp.float32)
         + b1_ref[...])
    h_ref[...] = h                                            # carry stays in VMEM

    # logits = Linear(H -> output_size)(hidden); output padded to 128 lanes.
    logits = (jnp.dot(h.astype(jnp.bfloat16), w2_ref[...],
                      preferred_element_type=jnp.float32)
              + b2_ref[...])

    # Mask padded class lanes so they do not affect the log-softmax.
    col = jax.lax.broadcasted_iota(jnp.int32, logits.shape, 1)
    logits = jnp.where(col < n_classes, logits, -jnp.inf)

    # Numerically-stable log-softmax along dim=1 (f32).
    m = jnp.max(logits, axis=1, keepdims=True)
    shifted = logits - m
    lse = jnp.log(jnp.sum(jnp.exp(shifted), axis=1, keepdims=True))
    out_ref[...] = (shifted - lse).astype(out_ref.dtype)


def rnn_forward_sequence(xs, h0, w1, b1, w2, b2, *, batch_block=None):
    """
    xs : (T, B, input_size) f32   per-step inputs
    h0 : (B, H)             f32   initial hidden state
    w1 : (H, input_size+H)  f32   PyTorch Linear weight layout
    b1 : (H,)
    w2 : (O, H)
    b2 : (O,)
    returns (log_softmax outputs (T, B, O), final hidden (B, H))
    """
    T, B, I = xs.shape
    H = w1.shape[0]
    O = w2.shape[0]
    assert w1.shape[1] == I + H
    bb = B if batch_block is None else batch_block
    assert B % bb == 0 and bb % 8 == 0, "batch block must be a multiple of 8"

    O_pad = max(128, ((O + 127) // 128) * 128)   # lane-dense output width

    bf16 = jnp.bfloat16
    # One-time (hoisted) weight prep: split the concat-matmul, transpose,
    # cast to bf16, pad the output projection to 128 lanes.
    w1x_t = jnp.asarray(w1[:, :I].T, dtype=bf16)                          # (I, H)
    w1h_t = jnp.asarray(w1[:, I:].T, dtype=bf16)                          # (H, H)
    b1r = b1.reshape(1, H).astype(jnp.float32)
    w2_t = jnp.zeros((H, O_pad), dtype=bf16).at[:, :O].set(w2.T.astype(bf16))
    b2r = jnp.zeros((1, O_pad), dtype=jnp.float32).at[:, :O].set(b2.astype(jnp.float32))
    xs_b = xs.astype(bf16)
    h0f = h0.astype(jnp.float32)

    flops = 2 * int(T) * int(B) * (I * H + H * H + H * O_pad)
    transcendentals = int(T) * int(B) * O_pad                 # exp in log-softmax
    bytes_accessed = (int(xs_b.size) * 2 + int(h0f.size) * 4
                      + (int(w1x_t.size) + int(w1h_t.size) + int(w2_t.size)) * 2
                      + (int(b1r.size) + int(b2r.size)) * 4
                      + int(T) * int(B) * O_pad * 4 + int(B) * H * 4)

    kernel = functools.partial(rnn_seq_kernel, n_classes=O)

    out_padded, h_final = pl.pallas_call(
        kernel,
        out_shape=(jax.ShapeDtypeStruct((T, B, O_pad), jnp.float32),
                   jax.ShapeDtypeStruct((B, H), jnp.float32)),
        grid=(B // bb, T),
        in_specs=[
            pl.BlockSpec((None, bb, I), lambda b, t: (t, b, 0)),   # x_t tile
            pl.BlockSpec((bb, H), lambda b, t: (b, 0)),            # h0 (resident)
            pl.BlockSpec((I, H), lambda b, t: (0, 0)),             # W1x^T  (VMEM-resident)
            pl.BlockSpec((H, H), lambda b, t: (0, 0)),             # W1h^T  (VMEM-resident)
            pl.BlockSpec((1, H), lambda b, t: (0, 0)),             # b1
            pl.BlockSpec((H, O_pad), lambda b, t: (0, 0)),         # W2^T   (VMEM-resident)
            pl.BlockSpec((1, O_pad), lambda b, t: (0, 0)),         # b2
        ],
        out_specs=(
            pl.BlockSpec((None, bb, O_pad), lambda b, t: (t, b, 0)),  # per-step log-probs
            pl.BlockSpec((bb, H), lambda b, t: (b, 0)),               # hidden carry (resident over t)
        ),
        compiler_params=pltpu.CompilerParams(
            dimension_semantics=("parallel", "arbitrary")),
        cost_estimate=pl.CostEstimate(flops=flops,
                                      transcendentals=transcendentals,
                                      bytes_accessed=bytes_accessed),
    )(xs_b, h0f, w1x_t, w1h_t, b1r, w2_t, b2r)

    return out_padded[:, :, :O], h_final


def rnn_forward(x, hidden, w1, b1, w2, b2):
    """Single-step forward, matching the PyTorch module's (output, hidden)."""
    out, h = rnn_forward_sequence(x[None], hidden, w1, b1, w2, b2)
    return out[0], h


def _torch_linear_init(key, out_features, in_features):
    """torch.nn.Linear default init: U[-1/sqrt(fan_in), 1/sqrt(fan_in)]."""
    kw, kb = jax.random.split(key)
    bound = 1.0 / (in_features ** 0.5)
    w = jax.random.uniform(kw, (out_features, in_features),
                           minval=-bound, maxval=bound, dtype=jnp.float32)
    b = jax.random.uniform(kb, (out_features,),
                           minval=-bound, maxval=bound, dtype=jnp.float32)
    return w, b


if __name__ == "__main__":
    T = 8            # sequence length (recurrence fused into one kernel)
    B = 8            # batch padded to the f32 sublane height
    INPUT_SIZE = 64  # one-hot character size
    HIDDEN = 128     # number_of_elements_in_hidden_state
    OUTPUT = 32      # number of classes (padded to 128 lanes inside the kernel)

    key = jax.random.PRNGKey(0)
    k_in, k_l1, k_l2 = jax.random.split(key, 3)

    xs = jax.random.normal(k_in, (T, B, INPUT_SIZE), dtype=jnp.float32)
    h0 = jnp.zeros((B, HIDDEN), dtype=jnp.float32)   # initialize_hidden_state()

    w1, b1 = _torch_linear_init(k_l1, HIDDEN, INPUT_SIZE + HIDDEN)
    w2, b2 = _torch_linear_init(k_l2, OUTPUT, HIDDEN)

    outs, h_final = rnn_forward_sequence(xs, h0, w1, b1, w2, b2)
    jax.block_until_ready((outs, h_final))

    # Reference: unrolled per-step PyTorch-style forward in plain JAX, using the
    # same bf16-input / f32-accumulation matmul precision as the kernel.
    bf = jnp.bfloat16
    w1x_t = w1[:, :INPUT_SIZE].T.astype(bf)
    w1h_t = w1[:, INPUT_SIZE:].T.astype(bf)
    w2_t = w2.T.astype(bf)
    h = h0
    outs_ref = []
    for t in range(T):
        h = (jnp.dot(xs[t].astype(bf), w1x_t, preferred_element_type=jnp.float32)
             + jnp.dot(h.astype(bf), w1h_t, preferred_element_type=jnp.float32)
             + b1)
        logits = jnp.dot(h.astype(bf), w2_t, preferred_element_type=jnp.float32) + b2
        outs_ref.append(
            logits - jax.scipy.special.logsumexp(logits, axis=1, keepdims=True))
    outs_ref = jnp.stack(outs_ref)

    assert jnp.allclose(h_final, h, atol=1e-3, rtol=1e-3), \
        float(jnp.max(jnp.abs(h_final - h)))
    assert jnp.allclose(outs, outs_ref, atol=1e-3, rtol=1e-3), \
        float(jnp.max(jnp.abs(outs - outs_ref)))
    assert jnp.allclose(jnp.exp(outs).sum(axis=-1), 1.0, atol=1e-3)

    print("KERNEL_OK")
</pallas_src>

<mosaic_0001>
module attributes {stable_mosaic.version = 11 : i64} {
  func.func @rnn_seq_kernel(%arg0: i32, %arg1: i32, %arg2: memref<1x8x64xbf16, #tpu.memory_space<vmem>>, %arg3: memref<8x128xf32, #tpu.memory_space<vmem>>, %arg4: memref<64x128xbf16, #tpu.memory_space<vmem>>, %arg5: memref<128x128xbf16, #tpu.memory_space<vmem>>, %arg6: memref<1x128xf32, #tpu.memory_space<vmem>>, %arg7: memref<128x128xbf16, #tpu.memory_space<vmem>>, %arg8: memref<1x128xf32, #tpu.memory_space<vmem>>, %arg9: memref<1x8x128xf32, #tpu.memory_space<vmem>>, %arg10: memref<8x128xf32, #tpu.memory_space<vmem>>) attributes {dimension_semantics = [#tpu.dimension_semantics<parallel>, #tpu.dimension_semantics<arbitrary>], iteration_bounds = array<i64: 1, 8>, scalar_prefetch = 0 : i64, scratch_operands = 0 : i64, tpu.core_type = #tpu.core_type<tc>, window_params = [{transform_indices = @transform_0, window_bounds = array<i64: 1, 8, 64>}, {transform_indices = @transform_1, window_bounds = array<i64: 8, 128>}, {pipeline_mode = #tpu.pipeline_mode<synchronous>, transform_indices = @transform_2, window_bounds = array<i64: 64, 128>}, {pipeline_mode = #tpu.pipeline_mode<synchronous>, transform_indices = @transform_3, window_bounds = array<i64: 128, 128>}, {pipeline_mode = #tpu.pipeline_mode<synchronous>, transform_indices = @transform_4, window_bounds = array<i64: 1, 128>}, {pipeline_mode = #tpu.pipeline_mode<synchronous>, transform_indices = @transform_5, window_bounds = array<i64: 128, 128>}, {pipeline_mode = #tpu.pipeline_mode<synchronous>, transform_indices = @transform_6, window_bounds = array<i64: 1, 128>}, {transform_indices = @transform_7, window_bounds = array<i64: 1, 8, 128>}, {transform_indices = @transform_8, window_bounds = array<i64: 8, 128>}]} {
    %c0_i32 = arith.constant 0 : i32
    %0 = arith.cmpi eq, %arg1, %c0_i32 : i32
    %1 = arith.extui %0 : i1 to i32
    %c0_i32_0 = arith.constant 0 : i32
    %2 = arith.cmpi ne, %1, %c0_i32_0 : i32
    scf.if %2 {
      %c0_25 = arith.constant 0 : index
      %c0_26 = arith.constant 0 : index
      %40 = vector.load %arg3[%c0_25, %c0_26] : memref<8x128xf32, #tpu.memory_space<vmem>>, vector<8x128xf32>
      %c0_27 = arith.constant 0 : index
      %c0_28 = arith.constant 0 : index
      %41 = vector.load %arg10[%c0_27, %c0_28] : memref<8x128xf32, #tpu.memory_space<vmem>>, vector<8x128xf32>
      tpu.vector_store %arg10[%c0_27, %c0_28], %40 {strides = array<i32>} : memref<8x128xf32, #tpu.memory_space<vmem>>, vector<8x128xf32>,
    } else {
    }
    %c0 = arith.constant 0 : index
    %c0_1 = arith.constant 0 : index
    %3 = vector.load %arg10[%c0, %c0_1] : memref<8x128xf32, #tpu.memory_space<vmem>>, vector<8x128xf32>
    %c0_2 = arith.constant 0 : index
    %c0_3 = arith.constant 0 : index
    %c0_4 = arith.constant 0 : index
    %4 = vector.load %arg2[%c0_2, %c0_3, %c0_4] : memref<1x8x64xbf16, #tpu.memory_space<vmem>>, vector<1x8x64xbf16>
    %5 = vector.shape_cast %4 : vector<1x8x64xbf16> to vector<8x64xbf16>
    %c0_5 = arith.constant 0 : index
    %c0_6 = arith.constant 0 : index
    %6 = vector.load %arg4[%c0_5, %c0_6] : memref<64x128xbf16, #tpu.memory_space<vmem>>, vector<64x128xbf16>
    %cst = arith.constant dense<0.000000e+00> : vector<8x128xf32>
    %7 = tpu.matmul %5, %6, %cst {dimension_numbers = #tpu.dot_dimension_numbers<[1], [0], [0], [1], [0, 0, 1, 1], [], []>} : vector<8x64xbf16>, vector<64x128xbf16>, vector<8x128xf32> -> vector<8x128xf32>
    %8 = arith.truncf %3 : vector<8x128xf32> to vector<8x128xbf16>
    %c0_7 = arith.constant 0 : index
    %c0_8 = arith.constant 0 : index
    %9 = vector.load %arg5[%c0_7, %c0_8] : memref<128x128xbf16, #tpu.memory_space<vmem>>, vector<128x128xbf16>
    %cst_9 = arith.constant dense<0.000000e+00> : vector<8x128xf32>
    %10 = tpu.matmul %8, %9, %cst_9 {dimension_numbers = #tpu.dot_dimension_numbers<[1], [0], [0], [1], [0, 0, 1, 1], [], []>} : vector<8x128xbf16>, vector<128x128xbf16>, vector<8x128xf32> -> vector<8x128xf32>
    %11 = arith.addf %7, %10 : vector<8x128xf32>
    %c0_10 = arith.constant 0 : index
    %c0_11 = arith.constant 0 : index
    %12 = vector.load %arg6[%c0_10, %c0_11] : memref<1x128xf32, #tpu.memory_space<vmem>>, vector<1x128xf32>
    %13 = vector.broadcast %12 : vector<1x128xf32> to vector<8x128xf32>
    %14 = arith.addf %11, %13 : vector<8x128xf32>
    %c0_12 = arith.constant 0 : index
    %c0_13 = arith.constant 0 : index
    %15 = vector.load %arg10[%c0_12, %c0_13] : memref<8x128xf32, #tpu.memory_space<vmem>>, vector<8x128xf32>
    tpu.vector_store %arg10[%c0_12, %c0_13], %14 {strides = array<i32>} : memref<8x128xf32, #tpu.memory_space<vmem>>, vector<8x128xf32>,
    %16 = arith.truncf %14 : vector<8x128xf32> to vector<8x128xbf16>
    %c0_14 = arith.constant 0 : index
    %c0_15 = arith.constant 0 : index
    %17 = vector.load %arg7[%c0_14, %c0_15] : memref<128x128xbf16, #tpu.memory_space<vmem>>, vector<128x128xbf16>
    %cst_16 = arith.constant dense<0.000000e+00> : vector<8x128xf32>
    %18 = tpu.matmul %16, %17, %cst_16 {dimension_numbers = #tpu.dot_dimension_numbers<[1], [0], [0], [1], [0, 0, 1, 1], [], []>} : vector<8x128xbf16>, vector<128x128xbf16>, vector<8x128xf32> -> vector<8x128xf32>
    %c0_17 = arith.constant 0 : index
    %c0_18 = arith.constant 0 : index
    %19 = vector.load %arg8[%c0_17, %c0_18] : memref<1x128xf32, #tpu.memory_space<vmem>>, vector<1x128xf32>
    %20 = vector.broadcast %19 : vector<1x128xf32> to vector<8x128xf32>
    %21 = arith.addf %18, %20 : vector<8x128xf32>
    %22 = tpu.iota {dimensions = array<i32: 1>} : vector<8x128xi32>
    %c32_i32 = arith.constant 32 : i32
    %23 = vector.broadcast %c32_i32 : i32 to vector<8x128xi32>
    %24 = arith.cmpi slt, %22, %23 : vector<8x128xi32>
    %cst_19 = arith.constant 0xFF800000 : f32
    %25 = vector.broadcast %cst_19 : f32 to vector<8x128xf32>
    %26 = arith.select %24, %21, %25 : vector<8x128xi1>, vector<8x128xf32>
    %cst_20 = arith.constant dense<0xFF800000> : vector<8xf32>
    %27 = vector.multi_reduction <maximumf>, %26, %cst_20 [1] : vector<8x128xf32> to vector<8xf32>
    %28 = vector.shape_cast %27 : vector<8xf32> to vector<8x1xf32>
    %29 = vector.broadcast %28 : vector<8x1xf32> to vector<8x128xf32>
    %30 = arith.subf %26, %29 : vector<8x128xf32>
    %31 = math.exp %30 : vector<8x128xf32>
    %cst_21 = arith.constant dense<0.000000e+00> : vector<8xf32>
    %32 = vector.multi_reduction <add>, %31, %cst_21 [1] : vector<8x128xf32> to vector<8xf32>
    %33 = vector.shape_cast %32 : vector<8xf32> to vector<8x1xf32>
    %34 = math.log %33 : vector<8x1xf32>
    %35 = vector.broadcast %34 : vector<8x1xf32> to vector<8x128xf32>
    %36 = arith.subf %30, %35 : vector<8x128xf32>
    %c0_22 = arith.constant 0 : index
    %c0_23 = arith.constant 0 : index
    %c0_24 = arith.constant 0 : index
    %37 = vector.load %arg9[%c0_22, %c0_23, %c0_24] : memref<1x8x128xf32, #tpu.memory_space<vmem>>, vector<1x8x128xf32>
    %38 = vector.shape_cast %37 : vector<1x8x128xf32> to vector<8x128xf32>
    %39 = vector.shape_cast %36 : vector<8x128xf32> to vector<1x8x128xf32>
    tpu.vector_store %arg9[%c0_22, %c0_23, %c0_24], %39 {strides = array<i32>} : memref<1x8x128xf32, #tpu.memory_space<vmem>>, vector<1x8x128xf32>,
    return
  }
  func.func @transform_0(%arg0: i32, %arg1: i32) -> (i32, i32, i32) {
    %c0_i32 = arith.constant 0 : i32
    %c0_i32_0 = arith.constant 0 : i32
    return %arg1, %arg0, %c0_i32 : i32, i32, i32
  }
  func.func @transform_1(%arg0: i32, %arg1: i32) -> (i32, i32) {
    %c0_i32 = arith.constant 0 : i32
    %c0_i32_0 = arith.constant 0 : i32
    return %arg0, %c0_i32 : i32, i32
  }
  func.func @transform_2(%arg0: i32, %arg1: i32) -> (i32, i32) {
    %c0_i32 = arith.constant 0 : i32
    %c0_i32_0 = arith.constant 0 : i32
    %c0_i32_1 = arith.constant 0 : i32
    return %c0_i32, %c0_i32_0 : i32, i32
  }
  func.func @transform_3(%arg0: i32, %arg1: i32) -> (i32, i32) {
    %c0_i32 = arith.constant 0 : i32
    %c0_i32_0 = arith.constant 0 : i32
    %c0_i32_1 = arith.constant 0 : i32
    return %c0_i32, %c0_i32_0 : i32, i32
  }
  func.func @transform_4(%arg0: i32, %arg1: i32) -> (i32, i32) {
    %c0_i32 = arith.constant 0 : i32
    %c0_i32_0 = arith.constant 0 : i32
    %c0_i32_1 = arith.constant 0 : i32
    return %c0_i32, %c0_i32_0 : i32, i32
  }
  func.func @transform_5(%arg0: i32, %arg1: i32) -> (i32, i32) {
    %c0_i32 = arith.constant 0 : i32
    %c0_i32_0 = arith.constant 0 : i32
    %c0_i32_1 = arith.constant 0 : i32
    return %c0_i32, %c0_i32_0 : i32, i32
  }
  func.func @transform_6(%arg0: i32, %arg1: i32) -> (i32, i32) {
    %c0_i32 = arith.constant 0 : i32
    %c0_i32_0 = arith.constant 0 : i32
    %c0_i32_1 = arith.constant 0 : i32
    return %c0_i32, %c0_i32_0 : i32, i32
  }
  func.func @transform_7(%arg0: i32, %arg1: i32) -> (i32, i32, i32) {
    %c0_i32 = arith.constant 0 : i32
    %c0_i32_0 = arith.constant 0 : i32
    return %arg1, %arg0, %c0_i32 : i32, i32, i32
  }
  func.func @transform_8(%arg0: i32, %arg1: i32) -> (i32, i32) {
    %c0_i32 = arith.constant 0 : i32
    %c0_i32_0 = arith.constant 0 : i32
    return %arg0, %c0_i32 : i32, i32
  }
}

</mosaic_0001>

<bundles_post_ra>
// kernel: tpu_custom_call.1
= control target key start
LH: loop header
LB: loop body
LE: loop exit
PB: predicated region body
PF: predicated region fallthrough
CT: control target
= control target key end

     0   :  { %s1836_s0 = inlined_call_operand.hbm [shape: bf16[8,8,64], index: 0, kind: input, shape index: {}]   ;;  %s1837_s1 = inlined_call_operand.hbm [shape: f32[8,128], index: 1, kind: input, shape index: {}]   ;;  %s1838_s2 = inlined_call_operand.hbm [shape: bf16[64,128], index: 2, kind: input, shape index: {}]   ;;  %s1839_s3 = inlined_call_operand.hbm [shape: bf16[128,128], index: 3, kind: input, shape index: {}]   ;;  %s1840_s4 = inlined_call_operand.vmem [shape: f32[1,128], index: 4, kind: input, shape index: {}]   ;;  %s1841_s5 = inlined_call_operand.hbm [shape: bf16[128,128], index: 5, kind: input, shape index: {}]   ;;  %s1842_s6 = inlined_call_operand.vmem [shape: f32[1,128], index: 6, kind: input, shape index: {}]   ;;  %s1843_s7 = inlined_call_operand.hbm [shape: f32[8,8,128], index: 7, kind: output, shape index: {0}]   ;;  %s1844_s8 = inlined_call_operand.hbm [shape: f32[8,128], index: 8, kind: output, shape index: {1}]  }
   0x1   :  { %1852 = sst [smem:[#allocation19_spill]] %s1837_s1 }
   0x2   :  { %1853 = sst [smem:[#allocation20_spill]] %s1838_s2 }
   0x3   :  { %1854 = sst [smem:[#allocation21_spill]] %s1839_s3 }
   0x4   :  { %1855 = sst [smem:[#allocation22_spill]] %s1841_s5 }
   0x5   :  { %14 = vsyncpa [#allocation3], 0 }
   0x6   :  { %16 = vsyncpa [#allocation3 + $0x1], 0 }
   0x7   :  { %17 = vsyncpa [#allocation6], 0 }
   0x8   :  { %18 = vsyncpa [#allocation9], 0 }
   0x9   :  { %19 = vsyncpa [#allocation4], 0 }
   0xa   :  { %21 = vsyncpa [#allocation4 + $0x1], 0 }
   0xb   :  { %22 = vsyncpa [#allocation13], 0  ;;  %s1472_s27 = smov 0   ;;  %s1474_s28 = smov 0  }
   0xc   :  { %s1476_s29 = smov 0   ;;  %s1478_s30 = smov 0  }
   0xd   :  { %s1480_s9 = smov 0   ;;  %s1482_s10 = smov 0  }
   0xe LB: > { %s1848_s11 = sadd.s32 4294967295, %s1414_s10   ;;  %p894_p0 = scmp.ge.s32.totalorder %s1414_s10, 1  ;;  %s1414_s10 = sphi %s1482_s10, %s28_s10   ;;  %s1410_s9 = sphi %s1480_s9, %s1881_s9   ;;  %s1406_s30 = sphi %s1478_s30, %s1880_s30   ;;  %s1402_s29 = sphi %s1476_s29, %s1879_s29   ;;  %s1398_s28 = sphi %s1474_s28, %s1878_s28   ;;  %s1394_s27 = sphi %s1472_s27, %s1877_s27  }
   0xf   : > { %p1506_p1 = scmp.eq.s32.totalorder %s1848_s11, 0  ;;  %p258_p2 = scmp.lt.s32.totalorder %s1414_s10, 9 }
  0x10   : > { %s1416_s14 = smov [#allocation5]   ;;  %s1417_s17 = smov [#allocation8]  }
  0x11   : > { %s1856_s12 = scalar_select %p1506_p1, 1, 0 }
  0x12   : > { %p1511_p3 = pnand %p894_p0, %p258_p2  ;;  %s273_s15 = sshll.u32 %s1416_s14, 4  ;;  %s274_s15 = int_to_ptr.vmem [resolvable:$true] %s273_s15 }
  0x13   : > { %s296_s18 = sshll.u32 %s1417_s17, 4  ;;  %s1418_s19 = smov [#allocation7]   ;;  %s1523_s18 = int_to_ptr.vmem [resolvable:$true] %s296_s18 }
  0x14   : > { %s1857_s13 = scalar_select %p1511_p3, 1, 0 }
  0x15   : > { %p1038_p4 = pneg %p1511_p3  ;;  %s1525_s20 = sshll.u32 %s1418_s19, 4  ;;  %s284_s20 = int_to_ptr.vmem [resolvable:$true] %s1525_s20 }
  0x16   : > { %s1859_s1 = sld [smem:[#allocation19_spill]] }
  0x17   : > { %p1519_p5 = pnand %p1038_p4, %p1506_p1 }
  0x19   : > { %p1535_p7 = pneg %p1519_p5 }
  0x1c   : > { %s1152_s23 = scalar_lea.hbm %s1859_s1, 128 }
  0x1d   : > { %p1153_p6 = scmp.ne.s32.totalorder %s1859_s1, %s1152_s23  ;;  %p1159_p10 = scmp.lt.u32.totalorder %s1152_s23, %s1859_s1 }
  0x1f   : > { %p1155_p8 = pnand %p1535_p7, %p1153_p6 }
  0x21   : > { %p1156_p9 = pneg %p1155_p8 }
  0x23   : > { %p1161_p11 = pnand %p1159_p10, %p1156_p9 }
  0x25   : > { %1164 = shalt.err (!%p1161_p11)
}
  0x26   : > { %s1165_s19 = scalar_lea.vmem %s274_s15, 128  ;;  %p1173_p2 = scmp.lt.s32.totalorder %s274_s15, %s274_s15 }
  0x27   : > { %p1166_p12 = scmp.ne.s32.totalorder %s274_s15, %s1165_s19  ;;  %p1174_p4 = scmp.lt.s32.totalorder %s1165_s19, %s1165_s19 }
  0x29   : > { %p1168_p13 = pnand %p1166_p12, %p1535_p7  ;;  %p1175_p3 = por %p1174_p4, %p1173_p2 }
  0x2b   : > { %p1169_p0 = pneg %p1168_p13 }
  0x2d   : > { %p1176_p1 = pnand %p1175_p3, %p1169_p0 }
  0x2f   : > { %1179 = shalt.err (!%p1176_p1)
}
  0x30   : > { %1041 = dma.hbm_to_vmem [thread:$0]  (!%p1519_p5), %s1859_s1, 128, %s274_s15, [#allocation6]  }
  0x31   : > { %s1861_s3 = sld [smem:[#allocation21_spill]] }
  0x37   : > { %s1180_s25 = scalar_lea.hbm %s1861_s3, 1024 }
  0x38   : > { %p1181_p6 = scmp.ne.s32.totalorder %s1861_s3, %s1180_s25  ;;  %p1187_p1 = scmp.lt.u32.totalorder %s1180_s25, %s1861_s3 }
  0x3a   : > { %p1183_p8 = pnand %p1181_p6, %p1535_p7 }
  0x3c   : > { %p1184_p9 = pneg %p1183_p8 }
  0x3e   : > { %p1189_p3 = pnand %p1187_p1, %p1184_p9 }
  0x40   : > { %1192 = shalt.err (!%p1189_p3)
}
  0x41   : > { %s1193_s15 = scalar_lea.vmem %s1523_s18, 1024  ;;  %p1201_p13 = scmp.lt.s32.totalorder %s1523_s18, %s1523_s18 }
  0x42   : > { %p1194_p10 = scmp.ne.s32.totalorder %s1523_s18, %s1193_s15  ;;  %p1202_p0 = scmp.lt.s32.totalorder %s1193_s15, %s1193_s15 }
  0x44   : > { %p1196_p11 = pnand %p1194_p10, %p1535_p7  ;;  %p1203_p2 = por %p1202_p0, %p1201_p13 }
  0x46   : > { %p1197_p12 = pneg %p1196_p11 }
  0x48   : > { %p1204_p4 = pnand %p1203_p2, %p1197_p12 }
  0x4a   : > { %1207 = shalt.err (!%p1204_p4)
}
  0x4b   : > { %s1419_s21 = smov 64   ;;  %s1420_s11 = smov 4  }
  0x4c   : > { %1047 = dma.hbm_to_vmem [thread:$0]  (!%p1519_p5), %s1861_s3, 1024, %s1523_s18, [#allocation9], %s1419_s21, %s1419_s21, %s1420_s11  }
  0x4d   : > { %s1862_s2 = sld [smem:[#allocation20_spill]] }
  0x53   : > { %s1208_s14 = scalar_lea.hbm %s1862_s2, 512 }
  0x54   : > { %p1209_p6 = scmp.ne.s32.totalorder %s1862_s2, %s1208_s14  ;;  %p1215_p1 = scmp.lt.u32.totalorder %s1208_s14, %s1862_s2 }
  0x56   : > { %p1211_p8 = pnand %p1209_p6, %p1535_p7 }
  0x58   : > { %p1212_p9 = pneg %p1211_p8 }
  0x5a   : > { %p1217_p3 = pnand %p1215_p1, %p1212_p9 }
  0x5c   : > { %1220 = shalt.err (!%p1217_p3)
}
  0x5d   : > { %s1221_s22 = scalar_lea.vmem %s284_s20, 512  ;;  %p1229_p13 = scmp.lt.s32.totalorder %s284_s20, %s284_s20 }
  0x5e   : > { %p1222_p10 = scmp.ne.s32.totalorder %s284_s20, %s1221_s22  ;;  %p1230_p0 = scmp.lt.s32.totalorder %s1221_s22, %s1221_s22 }
  0x60   : > { %p1224_p11 = pnand %p1222_p10, %p1535_p7  ;;  %p1231_p2 = por %p1230_p0, %p1229_p13 }
  0x62   : > { %p1225_p12 = pneg %p1224_p11 }
  0x64   : > { %p1232_p4 = pnand %p1231_p2, %p1225_p12 }
  0x66   : > { %1235 = shalt.err (!%p1232_p4)
}
  0x67   : > { %1044 = dma.hbm_to_vmem [thread:$0]  (!%p1519_p5), %s1862_s2, 512, %s284_s20, [#allocation6], %s1419_s21, %s1419_s21, %s1420_s11  }
  0x68   : > { %s1421_s23 = smov [#allocation10]   ;;  %s1863_s5 = sld [smem:[#allocation22_spill]] }
  0x69   : > { %s312_s24 = sshll.u32 %s1421_s23, 4  ;;  %s313_s24 = int_to_ptr.vmem [resolvable:$true] %s312_s24 }
  0x6e   : > { %s1236_s17 = scalar_lea.hbm %s1863_s5, 1024 }
  0x6f   : > { %p1237_p6 = scmp.ne.s32.totalorder %s1863_s5, %s1236_s17  ;;  %p1243_p1 = scmp.lt.u32.totalorder %s1236_s17, %s1863_s5 }
  0x71   : > { %p1239_p8 = pnand %p1237_p6, %p1535_p7 }
  0x73   : > { %p1240_p9 = pneg %p1239_p8 }
  0x75   : > { %p1245_p3 = pnand %p1243_p1, %p1240_p9 }
  0x77   : > { %1248 = shalt.err (!%p1245_p3)
}
  0x78   : > { %s1249_s20 = scalar_lea.vmem %s313_s24, 1024  ;;  %p1257_p13 = scmp.lt.s32.totalorder %s313_s24, %s313_s24 }
  0x79   : > { %p1250_p10 = scmp.ne.s32.totalorder %s313_s24, %s1249_s20  ;;  %p1258_p0 = scmp.lt.s32.totalorder %s1249_s20, %s1249_s20 }
  0x7b   : > { %p1252_p11 = pnand %p1250_p10, %p1535_p7  ;;  %p1259_p2 = por %p1258_p0, %p1257_p13 }
  0x7d   : > { %p1253_p12 = pneg %p1252_p11 }
  0x7f   : > { %p1260_p4 = pnand %p1259_p2, %p1253_p12 }
  0x81   : > { %1263 = shalt.err (!%p1260_p4)
}
  0x82   : > { %1050 = dma.hbm_to_vmem [thread:$0]  (!%p1519_p5), %s1863_s5, 1024, %s313_s24, [#allocation9], %s1419_s21, %s1419_s21, %s1420_s11  }
  0x83   : > { %s893_s16 = sadd.s32 4294967294, %s1414_s10   ;;  %s37_s26 = sadd.s32 1, %s1410_s9 }
  0x84   : > { %p38_p7 = scmp.ge.s32.totalorder %s37_s26, 8  ;;  %s49_s18 = sadd.s32 1, %s1402_s29 }
  0x85   : > { %p56_p6 = scmp.ne.s32.totalorder %s1402_s29, %s1398_s28  ;;  %p57_p8 = scmp.eq.s32.totalorder %s1414_s10, 0 }
  0x86   : > { %s1883_s26 = smov (%p38_p7, %s37_s26), 0  ;;  %p62_p1 = scmp.ne.s32.totalorder %s1398_s28, %s1394_s27 }
  0x87   : > { %p1628_p9 = por %p57_p8, %p56_p6  ;;  %s44_s21 = ssub.s32 %s1410_s9, %s1883_s26 }
  0x88   : > { %s1865_s11 = sadd.s32 4294967295, %s1414_s10   ;;  %p47_p3 = scmp.eq.s32.totalorder %s44_s21, 0 }
  0x89   : > { %p1638_p5 = scmp.eq.s32.totalorder %s1865_s11, 7  ;;  %p1867_p10 = scmp.ne.s32.totalorder %s1856_s12, 0 }
  0x8a   : > { %p225_p13 = scmp.eq.s32.totalorder %s893_s16, 7  ;;  %p1063_p2 = scmp.lt.s32.totalorder %s1414_s10, 8 }
  0x8b   : > { %s1866_s24 = scalar_select %p1638_p5, 1, 0 }
  0x8c   : > { %p1644_p11 = por %p1867_p10, %p62_p1  ;;  %p1650_p12 = por %p1638_p5, %p56_p6 }
  0x8d   : > { %s1655_s17 = scalar_select %p47_p3, %s1402_s29, %s49_s18  }
  0x8e   : > { %s1869_s14 = scalar_select %p1650_p12, 1, 0 }
  0x8f   : > { %p1657_p0 = por %p225_p13, %p62_p1  ;;  %s329_s15 = sand.u32 1, %s1402_s29  }
  0x90   : > { %s901_s22 = sshll.u32 %s1410_s9, 6  ;;  %s900_s20 = sshll.u32 %s329_s15, 2 }
  0x91   : > { %s1870_s19 = scalar_select %p1657_p0, 1, 0 }
  0x92   : > { %s1667_s21 = scalar_lea.hbm %s1836_s0, %s901_s22  ;;  %s333_s16 = scalar_lea.vmem [#allocation2], %s900_s20 }
  0x93   : > { %s341_s18 = sshll.u32 %s333_s16, 4  ;;  %p1671_p4 = pnand %p1063_p2, %p1628_p9  ;;  %s1675_s18 = int_to_ptr.vmem [resolvable:$true] %s341_s18 }
  0x94   : > { %s330_s2 = scalar_lea.sflag [#allocation3], %s329_s15  ;;  %s1264_s5 = scalar_lea.hbm %s1667_s21, 64 }
  0x95   : > { %p1265_p7 = scmp.ne.s32.totalorder %s1667_s21, %s1264_s5  ;;  %p1266_p6 = pneg %p1671_p4 }
  0x96   : > { %s1269_s23 = scalar_lea.hbm %s1836_s0, 512  ;;  %p1270_p9 = scmp.lt.u32.totalorder %s1667_s21, %s1836_s0 }
  0x97   : > { %p1267_p8 = pnand %p1266_p6, %p1265_p7  ;;  %p1271_p3 = scmp.lt.u32.totalorder %s1269_s23, %s1264_s5 }
  0x98   : > { %p1273_p13 = scmp.lt.u32.totalorder %s1264_s5, %s1667_s21 }
  0x99   : > { %p1268_p1 = pneg %p1267_p8  ;;  %p1272_p10 = por %p1271_p3, %p1270_p9 }
  0x9b   : > { %p1274_p2 = por %p1273_p13, %p1272_p10 }
  0x9d   : > { %p1275_p0 = pnand %p1274_p2, %p1268_p1 }
  0x9f   : > { %1278 = shalt.err (!%p1275_p0)
}
  0xa0   : > { %s1279_s15 = scalar_lea.vmem %s1675_s18, 64  ;;  %s1422_s16 = smov [#allocation2]  }
  0xa1   : > { %p1280_p7 = scmp.ne.s32.totalorder %s1675_s18, %s1279_s15  ;;  %s1284_s22 = sshll.u32 %s1422_s16, 4  ;;  %s1285_s22 = int_to_ptr.vmem [resolvable:$false] %s1284_s22 }
  0xa2   : > { %s1286_s20 = scalar_lea.vmem %s1285_s22, 128  ;;  %p1287_p5 = scmp.lt.s32.totalorder %s1675_s18, %s1285_s22 }
  0xa3   : > { %p1282_p8 = pnand %p1280_p7, %p1266_p6  ;;  %p1288_p9 = scmp.lt.s32.totalorder %s1286_s20, %s1279_s15 }
  0xa5   : > { %p1283_p12 = pneg %p1282_p8  ;;  %p1289_p3 = por %p1288_p9, %p1287_p5 }
  0xa7   : > { %p1290_p10 = pnand %p1289_p3, %p1283_p12 }
  0xa9   : > { %1293 = shalt.err (!%p1290_p10)
}
  0xaa   : > { %1054 = dma.hbm_to_vmem [thread:$0]  (!%p1671_p4), %s1667_s21, 64, %s1675_s18, %s330_s2  }
  0xab   : > { %p1872_p0 = scmp.ne.s32.totalorder %s1857_s13, 0 }
  0xac   : > { %s1705_s5 = sand.u32 (!%p1872_p0), 1, %s1398_s28  }
  0xad   : > { %350 = sbr.rel (%p1872_p0) target bundleno = 991 (0x3df), region = 48  ;;  %s903_s23 = sshll.u32 (!%p1872_p0), %s1705_s5, 2 }
  0xae   : > { %s353_s3 = scalar_lea.sflag (!%p1872_p0), [#allocation3], %s1705_s5  ;;  %s1709_s1 = scalar_lea.vmem (!%p1872_p0), [#allocation2], %s903_s23 }
  0xb4   : > { %1373 = dma.done.wait (%p1644_p11), %s353_s3, 64  }
  0xb5   : > { %1375 = vsyncadd (%p1644_p11), %s353_s3, 4294967232  ;;  %p1873_p5 = scmp.ne.s32.totalorder %s1856_s12, 0 }
  0xb7   : > { %1377 = dma.done.wait (%p1873_p5), [#allocation6], 640  }
  0xb8   : > { %1379 = vsyncadd (%p1873_p5), [#allocation6], 4294966656 }
  0xb9   : > { %1381 = dma.done.wait (%p1873_p5), [#allocation9], 2048  }
  0xba   : > { %1383 = vsyncadd (%p1873_p5), [#allocation9], 4294965248  ;;  %s908_s2 = sshll.u32 %s1705_s5, 3  ;;  %p909_p12 = scmp.ne.s32.totalorder %s1406_s30, 0 }
  0xbb   : > { %s1724_s13 = scalar_lea.vmem [#allocation11], %s908_s2  ;;  %v410_v0 = vld [vmem:[#allocation5] sm:$0xff] (!%p909_p12) }
  0xbc   : > { %409 = sbr.rel (%p909_p12) target bundleno = 195 (0xc3), region = 72  ;;  %411 = vst [vmem:[#allocation12] sm:$0xff] (!%p909_p12), %v410_v0 }
  0xc3 PF: > { %v1128_v1 = vld [vmem:[#allocation8] sm:$0xff]   ;;  %v1423_v2 = vmov 0.0   ;;  %v1129_v3 = vld [vmem:[#allocation8 + $0x8] sm:$0xff]   ;;  %vm1424_vm0 = vmmov 0   ;;  %v1130_v5 = vld [vmem:[#allocation8 + $0x10] sm:$0xff]   ;;  %vm551_vm1 = vcmask 523264   ;;  %v716_v37 = vlaneseq }
  0xc4   : > { %962 = vmatprep.subr.bf16.mxu0 %v1423_v2  ;;  %982 = vmatprep.subr.bf16.mxu1 %v1423_v2  ;;  %v1132_v4 = vld [vmem:[#allocation7] sm:$0xff]   ;;  %v1134_v6 = vld [vmem:[#allocation7 + $0x8] sm:$0xff]   ;;  %v1131_v7 = vld [vmem:[#allocation8 + $0x18] sm:$0xff]   ;;  %s1425_s11 = smov [#allocation12]   ;;  %p1874_p4 = scmp.ne.s32.totalorder %s1866_s24, 0 }
  0xc5   : > { %963 = vmatpush3.bf16.msra.mxu0 %v1128_v1  ;;  %990 = vmatprep.mubr.msk.bf16.mxu1 %vm1424_vm0, %v1423_v2  ;;  %v1136_v8 = vld [vmem:[#allocation7 + $0x10] sm:$0xff]   ;;  %v1133_v9 = vld [vmem:[#allocation8 + $0x20] sm:$0xff]   ;;  %v1138_v10 = vld [vmem:[#allocation7 + $0x18] sm:$0xff]   ;;  %v717_v38 = vand.u32 127, %v716_v37  ;;  %s759_s15 = sshll.u32 %s1425_s11, 4  ;;  %s760_s15 = int_to_ptr.vmem [resolvable:$true] %s759_s15 }
  0xc6   : > { %964 = vmatprep.subr.bf16.mxu0 %v1423_v2  ;;  %978 = vmatprep.mubr.msk.bf16.mxu0 %vm1424_vm0, %v1423_v2  ;;  %v1135_v11 = vld [vmem:[#allocation8 + $0x28] sm:$0xff]   ;;  %v413_v12 = vld [vmem:[%s1709_s1] sm:$0xf]  ;;  %v1140_v13 = vld [vmem:[#allocation10] sm:$0xff]   ;;  %s1294_s16 = scalar_lea.vmem %s760_s15, 128  ;;  %p1301_p13 = scmp.lt.s32.totalorder %s760_s15, %s760_s15 }
  0xc7   : > { %983 = vmatpush3.bf16.msra.mxu1 %v1132_v4  ;;  %v1137_v14 = vld [vmem:[#allocation8 + $0x30] sm:$0xff]   ;;  %v1141_v15 = vld [vmem:[#allocation10 + $0x8] sm:$0xff]   ;;  %v1139_v16 = vld [vmem:[#allocation8 + $0x38] sm:$0xff]   ;;  %vm718_vm2 = vcmp.lt.s32.totalorder %v717_v38, 32  ;;  %p1295_p11 = scmp.ne.s32.totalorder %s760_s15, %s1294_s16  ;;  %p1302_p2 = scmp.lt.s32.totalorder %s1294_s16, %s1294_s16 }
  0xc8   : > { %984 = vmatprep.subr.bf16.mxu1 %v1423_v2  ;;  %v412_v17 = vld [vmem:[#allocation12] sm:$0xff]  ;;  %v1143_v20 = vld [vmem:[#allocation10 + $0x18] sm:$0xff]   ;;  %v1144_v21 = vld [vmem:[#allocation10 + $0x20] sm:$0xff]  }
  0xc9   : > { %965 = vmatpush3.bf16.msra.mxu0 %v1129_v3  ;;  %v1142_v18 = vld [vmem:[#allocation10 + $0x10] sm:$0xff]   ;;  %v422_v19 = vpack.c.bf16 %v412_v17, %v412_v17  ;;  %v1145_v22 = vld [vmem:[#allocation10 + $0x28] sm:$0xff]   ;;  %v1147_v24 = vld [vmem:[#allocation10 + $0x38] sm:$0xff]   ;;  %p1296_p6 = pnand %p1295_p11, %p1874_p4  ;;  %p1303_p7 = por %p1302_p2, %p1301_p13 }
  0xca   : > { %966 = vmatprep.subr.bf16.mxu0 %v1423_v2  ;;  %v1146_v23 = vld [vmem:[#allocation10 + $0x30] sm:$0xff]  }
  0xcb   : > { %985 = vmatpush3.bf16.msra.mxu1 %v1134_v6  ;;  %v923_v30 = vld [vmem:[%s1840_s4] ss:$0 sm:$0xff]  ;;  %p1297_p1 = pneg %p1296_p6 }
  0xcc   : > { %986 = vmatprep.subr.bf16.mxu1 %v1423_v2  ;;  %v924_v39 = vld [vmem:[%s1842_s6] ss:$0 sm:$0xff] }
  0xcd   : > { %967 = vmatpush3.bf16.msra.mxu0 %v1130_v5  ;;  %p1304_p8 = pnand %p1303_p7, %p1297_p1 }
  0xce   : > { %968 = vmatprep.subr.bf16.mxu0 %v1423_v2 }
  0xcf   : > { %987 = vmatpush3.bf16.msra.mxu1 %v1136_v8 }
  0xd0   : > { %988 = vmatprep.subr.bf16.mxu1 %v1423_v2 }
  0xd1   : > { %969 = vmatpush3.bf16.msra.mxu0 %v1131_v7 }
  0xd2   : > { %970 = vmatprep.subr.bf16.mxu0 %v1423_v2 }
  0xd3   : > { %989 = vmatpush3.bf16.msra.mxu1 %v1138_v10 }
  0xd4   : > { %994 = vmatprep.subr.bf16.mxu1 %v1423_v2 }
  0xd5   : > { %971 = vmatpush3.bf16.msra.mxu0 %v1133_v9 }
  0xd6   : > { %972 = vmatprep.subr.bf16.mxu0 %v1423_v2  ;;  %991 = vmatmul.mubr.msk.bf16.vlgmr.msra.gmra.mrb[0].mxu1 %vm551_vm1, %v413_v12 }
  0xd7   : > { %995 = vmatpush3.bf16.msra.mxu1 %v1140_v13  ;;  %1010 = vmatprep.mubr.msk.bf16.mxu1 %vm1424_vm0, %v1423_v2 }
  0xd8   : > { %996 = vmatprep.subr.bf16.mxu1 %v1423_v2 }
  0xd9   : > { %973 = vmatpush3.bf16.msra.mxu0 %v1135_v11 }
  0xda   : > { %974 = vmatprep.subr.bf16.mxu0 %v1423_v2 }
  0xdb   : > { %997 = vmatpush3.bf16.msra.mxu1 %v1141_v15 }
  0xdc   : > { %998 = vmatprep.subr.bf16.mxu1 %v1423_v2 }
  0xdd   : > { %975 = vmatpush3.bf16.msra.mxu0 %v1137_v14 }
  0xde   : > { %976 = vmatprep.subr.bf16.mxu0 %v1423_v2 }
  0xdf   : > { %999 = vmatpush3.bf16.msra.mxu1 %v1142_v18 }
  0xe0   : > { %1000 = vmatprep.subr.bf16.mxu1 %v1423_v2 }
  0xe1   : > { %977 = vmatpush3.bf16.msra.mxu0 %v1139_v16 }
  0xe3   : > { %1001 = vmatpush3.bf16.msra.mxu1 %v1143_v20 }
  0xe4   : > { %979 = vmatmul.mubr.bf16.vlgmr.msra.gmra.mrb[0].mxu0 %v422_v19  ;;  %1002 = vmatprep.subr.bf16.mxu1 %v1423_v2 }
  0xe7   : > { %1003 = vmatpush3.bf16.msra.mxu1 %v1144_v21 }
  0xe8   : > { %1004 = vmatprep.subr.bf16.mxu1 %v1423_v2 }
  0xeb   : > { %1005 = vmatpush3.bf16.msra.mxu1 %v1145_v22 }
  0xec   : > { %1006 = vmatprep.subr.bf16.mxu1 %v1423_v2 }
  0xef   : > { %1007 = vmatpush3.bf16.msra.mxu1 %v1146_v23 }
  0xf0   : > { %1008 = vmatprep.subr.bf16.mxu1 %v1423_v2 }
  0xf3   : > { %1009 = vmatpush3.bf16.msra.mxu1 %v1147_v24 }
 0x1a9   : > { %v589_v25 = vpop.f32.mrb[0].mxu1 }
 0x1aa   : > { %v992_v26 = vpop.f32.mrb[1].mxu1 }
 0x1ab   : > { %v592_v27 = vpop.f32.mrb[2].mxu1 }
 0x1ac   : > { %v993_v28 = vpop.f32.mrb[3].mxu1 }
 0x1b7   : > { %v521_v29 = vpop.f32.mrb[0].mxu0 }
 0x1b8   : > { %v590_v31 = vadd.f32 %v589_v25, %v521_v29  ;;  %v980_v32 = vpop.f32.mrb[1].mxu0 }
 0x1b9   : > { %v524_v33 = vpop.f32.mrb[2].mxu0 }
 0x1ba   : > { %v602_v34 = vadd.f32 %v923_v30, %v590_v31  ;;  %v981_v35 = vpop.f32.mrb[3].mxu0 }
 0x1bc   : > { %v604_v36 = vpack.c.bf16 %v602_v34, %v602_v34  ;;  %603 = vst [vmem:[#allocation12] sm:$0xff] %v602_v34 }
 0x1be   : > { %1011 = vmatmul.mubr.bf16.vlgmr.msra.gmra.mrb[4].mxu1 %v604_v36 }
 0x291   : > { %v710_v40 = vpop.f32.mrb[4].mxu1 }
 0x292   : > { %v711_v41 = vadd.f32 %v924_v39, %v710_v40  ;;  %v1012_v42 = vpop.f32.mrb[5].mxu1 }
 0x293   : > { %v713_v43 = vpop.f32.mrb[6].mxu1 }
 0x294   : > { %v1013_v44 = vpop.f32.mrb[7].mxu1  ;;  %v719_v45 = vsel %vm718_vm2, %v711_v41, -inf }
 0x295   : > { %720 = vmax.xlane.f32.xlu0 %v719_v45 }
 0x322   : > { %v721_v46 = vpop.xlane.xlu0 %720 }
 0x323   : > { %v722_v47 = vsub.f32 %v719_v45, %v721_v46 }
 0x325   : > { %v723_v48 = vmul.f32 1.442695, %v722_v47 }
 0x327   : > { %1148 = vpow2.f32 %v723_v48 }
 0x331   : > { %v1149_v49 = vpop.eup %1148 }
 0x332   : > { %725 = vadd.xlane.f32.xlu0 %v1149_v49 }
 0x333   : > { %1307 = shalt.err (!%p1304_p8)
}
 0x334   : > { %s1308_s23 = scalar_lea.hbm %s1844_s8, 128 }
 0x335   : > { %p1309_p9 = scmp.ne.s32.totalorder %s1844_s8, %s1308_s23  ;;  %p1314_p0 = scmp.lt.u32.totalorder %s1308_s23, %s1844_s8 }
 0x337   : > { %p1310_p3 = pnand %p1309_p9, %p1874_p4 }
 0x339   : > { %p1311_p10 = pneg %p1310_p3 }
 0x33b   : > { %p1316_p5 = pnand %p1314_p0, %p1311_p10 }
 0x33d   : > { %1319 = shalt.err (!%p1316_p5)
}
 0x33e   : > { %1034 = dma.vmem_to_hbm [thread:$0]  (%p1874_p4), %s760_s15, 128, %s1844_s8, [#allocation13]  }
 0x33f   : > { %s934_s18 = sshll.u32 %s1406_s30, 7  ;;  %s746_s11 = sshll.u32 %s1724_s13, 4  ;;  %s1785_s11 = int_to_ptr.vmem [resolvable:$true] %s746_s11 }
 0x340   : > { %s1783_s20 = scalar_lea.hbm %s1843_s7, %s934_s18  ;;  %s732_s23 = scalar_lea.sflag [#allocation4], %s1705_s5 }
 0x341   : > { %s1320_s15 = scalar_lea.vmem %s1785_s11, 128  ;;  %p1875_p11 = scmp.ne.s32.totalorder %s1869_s14, 0 }
 0x342   : > { %p1321_p12 = scmp.ne.s32.totalorder %s1785_s11, %s1320_s15  ;;  %s1426_s30 = smov [#allocation11]  }
 0x343   : > { %s1324_s3 = sshll.u32 %s1426_s30, 4  ;;  %s1325_s3 = int_to_ptr.vmem [resolvable:$false] %s1324_s3 }
 0x344   : > { %p1322_p6 = pnand %p1321_p12, %p1875_p11  ;;  %s1326_s1 = scalar_lea.vmem %s1325_s3, 256 }
 0x345   : > { %p1327_p13 = scmp.lt.s32.totalorder %s1785_s11, %s1325_s3  ;;  %p1328_p2 = scmp.lt.s32.totalorder %s1326_s1, %s1320_s15 }
 0x346   : > { %p1323_p1 = pneg %p1322_p6 }
 0x347   : > { %p1329_p7 = por %p1328_p2, %p1327_p13 }
 0x349   : > { %p1330_p8 = pnand %p1329_p7, %p1323_p1 }
 0x3bf   : > { %v726_v50 = vpop.xlane.xlu0 %725 }
 0x3c0   : > { %1150 = vlog2.f32 %v726_v50 }
 0x3ca   : > { %v1151_v51 = vpop.eup %1150 }
 0x3cb   : > { %v728_v52 = vmul.f32 0.6931472, %v1151_v51 }
 0x3cd   : > { %v729_v53 = vsub.f32 %v722_v47, %v728_v52 }
 0x3cf   : > { %730 = vst [vmem:[%s1724_s13] sm:$0xff] %v729_v53 }
 0x3d0   : > { %1333 = shalt.err (!%p1330_p8)
}
 0x3d1   : > { %s1334_s5 = scalar_lea.hbm %s1783_s20, 128  ;;  %s1338_s12 = scalar_lea.hbm %s1843_s7, 1024 }
 0x3d2   : > { %p1335_p9 = scmp.ne.s32.totalorder %s1783_s20, %s1334_s5  ;;  %p1339_p0 = scmp.lt.u32.totalorder %s1783_s20, %s1843_s7 }
 0x3d3   : > { %p1340_p5 = scmp.lt.u32.totalorder %s1338_s12, %s1334_s5  ;;  %p1342_p6 = scmp.lt.u32.totalorder %s1334_s5, %s1783_s20 }
 0x3d4   : > { %p1336_p3 = pnand %p1335_p9, %p1875_p11 }
 0x3d5   : > { %p1341_p12 = por %p1340_p5, %p1339_p0 }
 0x3d6   : > { %p1337_p10 = pneg %p1336_p3 }
 0x3d7   : > { %p1343_p1 = por %p1342_p6, %p1341_p12 }
 0x3d9   : > { %p1344_p13 = pnand %p1343_p1, %p1337_p10 }
 0x3db   : > { %1347 = shalt.err (!%p1344_p13)
}
 0x3dc   : > { %1032 = dma.vmem_to_hbm [thread:$0]  (%p1875_p11), %s1785_s11, 128, %s1783_s20, %s732_s23  }
 0x3dd   : > { %1385 = dma.done.wait (%p1874_p4), [#allocation13], 128  }
 0x3de   : > { %1387 = vsyncadd (%p1874_p4), [#allocation13], 4294967168 }
 0x3df PF: > { %p1070_p2 = scmp.ge.s32.totalorder %s1414_s10, 2  ;;  %s775_s18 = sand.u32 1, %s1394_s27  }
 0x3e0   : > { %p1876_p7 = scmp.ne.s32.totalorder %s1870_s19, 0  ;;  %s776_s16 = scalar_lea.sflag [#allocation4], %s775_s18 }
 0x3e2   : > { %p1056_p8 = pnand %p1070_p2, %p1876_p7 }
 0x3e4   : > { %1389 = dma.done.wait (!%p1056_p8), %s776_s16, 128  }
 0x3e5   : > { %1391 = vsyncadd (!%p1056_p8), %s776_s16, 4294967168  ;;  %s28_s10 = sadd.s32 1, %s1414_s10   ;;  %s1877_s27 = smov %s1398_s28 }
 0x3e6   : > { %p25_p9 = scmp.ge.s32.totalorder %s28_s10, 10   ;;  %s1878_s28 = smov %s1402_s29 }
 0x3e7   : > { %s1879_s29 = smov %s1655_s17  ;;  %s1880_s30 = smov %s1410_s9 }
 0x3e8   : > { %s1881_s9 = smov %s1883_s26  ;;  %27 = sbr.rel (!%p25_p9) target bundleno = 14 (0xe), region = 123 }
 0x3ef   :  { %781 = vsyncpa [#allocation3], 1 }
 0x3f0   :  { %783 = vsyncpa [#allocation3 + $0x1], 1 }
 0x3f1   :  { %784 = vsyncpa [#allocation6], 1 }
 0x3f2   :  { %785 = vsyncpa [#allocation9], 1 }
 0x3f3   :  { %786 = vsyncpa [#allocation4], 1 }
 0x3f4   :  { %788 = vsyncpa [#allocation4 + $0x1], 1 }
 0x3f5   :  { %789 = vsyncpa [#allocation13], 1 }

</bundles_post_ra>
